<compile_context>
chip_gen: v5e
topology: v5e:2x2
jax: 0.10.0
libtpu: 0.0.40
codegen_flags: <defaults>
</compile_context>

<pallas_src>
import jax
import jax.numpy as jnp
from jax.experimental import pallas as pl
from jax.experimental.pallas import tpu as pltpu

_EPS = 1e-8


def _extra_loss_kernel(masks_ref, rowvalid_ref, w_ref, out_ref):
    """One grid step: G groups of `pack` blocks fused into (kn, kn) grams."""
    w = w_ref[...]                    # (G, kn, D), native dtype (MXU operand)
    eye = masks_ref[0]                # (kn, kn) f32 {0,1}: identity
    keep = masks_ref[1]               # (kn, kn) f32 {0,1}: block-diagonal mask
    valid = rowvalid_ref[0]           # (G, kn)  f32 {0,1}: non-padded rows

    # Packed Gram: NT contraction over D, f32 accumulation on the MXU.
    gram = jnp.einsum("gnd,gmd->gnm", w, w,
                      preferred_element_type=jnp.float32)        # (G, kn, kn)

    # Row squared norms off the gram diagonal: same precision as the diagonal
    # inside the softmax denominator; no f32 copy of the weight tile needed.
    norms2 = jnp.sum(gram * eye, axis=-1)                         # (G, kn)
    inv_n = 1.0 / jnp.maximum(jnp.sqrt(norms2), _EPS)             # (G, kn)

    logits = gram * inv_n[:, :, None] * inv_n[:, None, :]         # cosine sims

    # |logits| <= 1 (Cauchy-Schwarz + eps clamp) -> exp is overflow-safe, so
    # the logsumexp max pass is dropped.
    sum_e = jnp.sum(jnp.exp(logits) * keep, axis=-1)              # (G, kn)
    lse = jnp.log(sum_e)
    diag = norms2 * inv_n * inv_n                                 # logits[.,i,i]

    per_row = (lse - diag) * valid                                # (G, kn)

    # Per-step partial sum broadcast into a lane-dense (8, 128) output tile
    # (unmasked vst); the ~grid-length reduction happens in XLA afterwards.
    s = jnp.sum(per_row, axis=(0, 1), keepdims=True)              # (1, 1)
    out_ref[...] = jnp.broadcast_to(s.reshape(1, 1, 1), out_ref.shape)


def extra_loss(block_weights, lambd, *, pack_lanes=256, vmem_limit_bytes=None,
               headroom_bytes=4 << 20):
    """block_weights: (B, N, D) stacked ResNetBasicblock weights."""
    B, N, D = block_weights.shape
    if B == 0:
        return jnp.float32(0.0) * lambd
    itemsize = jnp.dtype(block_weights.dtype).itemsize

    # Per-generation VMEM limit: ~75% of physical, set explicitly so v5e is not
    # capped at its 16 MiB default scoped limit, v6e uses its 128 MiB, and v7x
    # is re-derived for its 64 MiB.  Conservative fallback if the query fails.
    if vmem_limit_bytes is None:
        try:
            phys = int(pltpu.get_tpu_info().vmem_capacity_bytes)
        except Exception:
            phys = 64 << 20
        vmem_limit_bytes = min(phys * 3 // 4, 112 << 20)
    budget = vmem_limit_bytes - headroom_bytes

    # MXU-fill packing factor: pack*N ~ 256 lanes (also makes exp/lse lane-dense).
    pack = max(1, pack_lanes // N) if N < pack_lanes else 1
    pack = min(pack, B)

    def per_group_bytes(k):
        kn = k * N
        # double-buffered weight tile + gram/logits/exp f32 temporaries
        return 2 * kn * D * itemsize + 4 * kn * kn * 4

    def const_bytes(k):
        kn = k * N
        # double-buffered (2, kn, kn) f32 mask slab
        return 4 * kn * kn * 4

    while pack > 1 and per_group_bytes(pack) + const_bytes(pack) > budget:
        pack //= 2

    kn = pack * N
    b_pack = pl.cdiv(B, pack) * pack               # blocks after pack padding
    groups_total = b_pack // pack
    avail = max(0, budget - const_bytes(pack))
    gps = max(1, min(groups_total, avail // per_group_bytes(pack)))
    grid = pl.cdiv(groups_total, gps)
    gps = pl.cdiv(groups_total, grid)              # rebalance groups per step
    b_pad = grid * gps * pack                      # total padded block count

    w = block_weights
    if b_pad != B:
        pad = jnp.zeros((b_pad - B, N, D), dtype=w.dtype)
        w = jnp.concatenate([w, pad], axis=0)
    w = w.reshape(grid * gps, kn, D)               # contiguous -> free reshape

    # Host-built 0/1 f32 masks: identity (diagonal/norm extraction),
    # block-diagonal (softmax support) and padded-row validity.
    blk_id = jnp.arange(kn) // N
    keep = (blk_id[:, None] == blk_id[None, :]).astype(jnp.float32)
    eye = jnp.eye(kn, dtype=jnp.float32)
    masks = jnp.stack([eye, keep], axis=0)                        # (2, kn, kn)
    rowvalid = jnp.repeat((jnp.arange(b_pad) < B).astype(jnp.float32), N)
    rowvalid = rowvalid.reshape(grid, gps, kn)

    partials = pl.pallas_call(
        _extra_loss_kernel,
        out_shape=jax.ShapeDtypeStruct((grid, 8, 128), jnp.float32),
        grid_spec=pltpu.PrefetchScalarGridSpec(
            num_scalar_prefetch=0,
            grid=(grid,),
            in_specs=[
                pl.BlockSpec((2, kn, kn), lambda g: (0, 0, 0)),
                pl.BlockSpec((1, gps, kn), lambda g: (g, 0, 0)),
                pl.BlockSpec((gps, kn, D), lambda g: (g, 0, 0)),
            ],
            out_specs=pl.BlockSpec((1, 8, 128), lambda g: (g, 0, 0)),
        ),
        compiler_params=pltpu.CompilerParams(
            dimension_semantics=("parallel",),       # 2-TC split on v7x
            vmem_limit_bytes=int(vmem_limit_bytes)),
    )(masks, rowvalid, w)

    # Tiny epilogue in plain XLA: grid-length sum, the 1/N CE mean, and lambd.
    return jnp.sum(partials[:, 0, 0]) * (1.0 / N) * lambd


def extra_loss_ref(block_weights, lambd):
    """Pure-JAX reference mirroring the PyTorch forward (both CE passes)."""
    total = 0.0
    for w in block_weights:
        w = w.astype(jnp.float32)
        norms = jnp.maximum(jnp.linalg.norm(w, axis=-1, keepdims=True), 1e-8)
        wn = w / norms
        logits = wn @ wn.T
        labels = jnp.arange(w.shape[0])

        def ce(lg):
            return jnp.mean(
                jax.nn.logsumexp(lg, axis=-1)
                - lg[jnp.arange(lg.shape[0]), labels])

        total = total + (ce(logits) + ce(logits.T)) * 0.5
    return total * lambd


if __name__ == "__main__":
    key = jax.random.PRNGKey(0)
    # Two synthetic ResNetBasicblock "weight" parameters, each of shape (N, D).
    B, N, D = 2, 8, 32
    lambd = 0.1
    block_weights = jax.random.normal(key, (B, N, D), dtype=jnp.float32)

    out = jax.block_until_ready(extra_loss(block_weights, lambd))

    ref = extra_loss_ref(block_weights, lambd)
    assert jnp.allclose(out, ref, atol=1e-5, rtol=1e-5), (out, ref)
    print("KERNEL_OK")
</pallas_src>

<mosaic_0001>
module attributes {stable_mosaic.version = 11 : i64} {
  func.func @_extra_loss_kernel(%arg0: i32, %arg1: memref<2x16x16xf32, #tpu.memory_space<vmem>>, %arg2: memref<1x1x16xf32, #tpu.memory_space<vmem>>, %arg3: memref<1x16x32xf32, #tpu.memory_space<vmem>>, %arg4: memref<1x8x128xf32, #tpu.memory_space<vmem>>) attributes {dimension_semantics = [#tpu.dimension_semantics<parallel>], iteration_bounds = array<i64: 1>, scalar_prefetch = 0 : i64, scratch_operands = 0 : i64, tpu.core_type = #tpu.core_type<tc>, window_params = [{pipeline_mode = #tpu.pipeline_mode<synchronous>, transform_indices = @transform_0, window_bounds = array<i64: 2, 16, 16>}, {transform_indices = @transform_1, window_bounds = array<i64: 1, 1, 16>}, {transform_indices = @transform_2, window_bounds = array<i64: 1, 16, 32>}, {transform_indices = @transform_3, window_bounds = array<i64: 1, 8, 128>}]} {
    %c0 = arith.constant 0 : index
    %c0_0 = arith.constant 0 : index
    %c0_1 = arith.constant 0 : index
    %0 = vector.load %arg3[%c0, %c0_0, %c0_1] : memref<1x16x32xf32, #tpu.memory_space<vmem>>, vector<1x16x32xf32>
    %c0_2 = arith.constant 0 : index
    %c0_3 = arith.constant 0 : index
    %c0_4 = arith.constant 0 : index
    %1 = vector.load %arg1[%c0_2, %c0_3, %c0_4] : memref<2x16x16xf32, #tpu.memory_space<vmem>>, vector<1x16x16xf32>
    %2 = vector.shape_cast %1 : vector<1x16x16xf32> to vector<16x16xf32>
    %c1 = arith.constant 1 : index
    %c0_5 = arith.constant 0 : index
    %c0_6 = arith.constant 0 : index
    %3 = vector.load %arg1[%c1, %c0_5, %c0_6] : memref<2x16x16xf32, #tpu.memory_space<vmem>>, vector<1x16x16xf32>
    %4 = vector.shape_cast %3 : vector<1x16x16xf32> to vector<16x16xf32>
    %c0_7 = arith.constant 0 : index
    %c0_8 = arith.constant 0 : index
    %c0_9 = arith.constant 0 : index
    %5 = vector.load %arg2[%c0_7, %c0_8, %c0_9] : memref<1x1x16xf32, #tpu.memory_space<vmem>>, vector<1x1x16xf32>
    %6 = vector.shape_cast %5 : vector<1x1x16xf32> to vector<1x16xf32>
    "tpu.trace_start"() <{level = 10 : i32, message = "gnd,gmd->gnm"}> : () -> ()
    %cst = arith.constant dense<0.000000e+00> : vector<1x16x16xf32>
    %7 = tpu.matmul %0, %0, %cst {dimension_numbers = #tpu.dot_dimension_numbers<[2], [2], [1], [1], [0, 0, 0, 1, 1, 1], [0], [0]>} : vector<1x16x32xf32>, vector<1x16x32xf32>, vector<1x16x16xf32> -> vector<1x16x16xf32>
    "tpu.trace_stop"() : () -> ()
    %8 = vector.shape_cast %2 : vector<16x16xf32> to vector<1x16x16xf32>
    %9 = arith.mulf %7, %8 : vector<1x16x16xf32>
    %cst_10 = arith.constant dense<0.000000e+00> : vector<1x16xf32>
    %10 = vector.multi_reduction <add>, %9, %cst_10 [2] : vector<1x16x16xf32> to vector<1x16xf32>
    %11 = math.sqrt %10 : vector<1x16xf32>
    %cst_11 = arith.constant 9.99999993E-9 : f32
    %12 = vector.broadcast %cst_11 : f32 to vector<1x16xf32>
    %13 = arith.maximumf %11, %12 : vector<1x16xf32>
    %cst_12 = arith.constant 1.000000e+00 : f32
    %14 = vector.broadcast %cst_12 : f32 to vector<1x16xf32>
    %15 = arith.divf %14, %13 : vector<1x16xf32>
    %16 = vector.shape_cast %15 : vector<1x16xf32> to vector<1x16x1xf32>
    %17 = vector.broadcast %16 : vector<1x16x1xf32> to vector<1x16x16xf32>
    %18 = arith.mulf %7, %17 : vector<1x16x16xf32>
    %19 = vector.shape_cast %15 : vector<1x16xf32> to vector<1x1x16xf32>
    %20 = vector.broadcast %19 : vector<1x1x16xf32> to vector<1x16x16xf32>
    %21 = arith.mulf %18, %20 : vector<1x16x16xf32>
    %22 = math.exp %21 : vector<1x16x16xf32>
    %23 = vector.shape_cast %4 : vector<16x16xf32> to vector<1x16x16xf32>
    %24 = arith.mulf %22, %23 : vector<1x16x16xf32>
    %cst_13 = arith.constant dense<0.000000e+00> : vector<1x16xf32>
    %25 = vector.multi_reduction <add>, %24, %cst_13 [2] : vector<1x16x16xf32> to vector<1x16xf32>
    %26 = math.log %25 : vector<1x16xf32>
    %27 = arith.mulf %10, %15 : vector<1x16xf32>
    %28 = arith.mulf %27, %15 : vector<1x16xf32>
    %29 = arith.subf %26, %28 : vector<1x16xf32>
    %30 = arith.mulf %29, %6 : vector<1x16xf32>
    %31 = vector.shape_cast %30 : vector<1x16xf32> to vector<1x1x16xf32>
    %cst_14 = arith.constant dense<0.000000e+00> : vector<1xf32>
    %32 = vector.multi_reduction <add>, %31, %cst_14 [1, 2] : vector<1x1x16xf32> to vector<1xf32>
    %33 = vector.shape_cast %32 : vector<1xf32> to vector<1x1x1xf32>
    %34 = vector.extract %33[0, 0, 0] : f32 from vector<1x1x1xf32>
    %35 = vector.broadcast %34 : f32 to vector<1x1xf32>
    %36 = vector.shape_cast %35 : vector<1x1xf32> to vector<1x1x1xf32>
    %37 = vector.shape_cast %36 : vector<1x1x1xf32> to vector<1x1x1xf32>
    %38 = vector.broadcast %37 : vector<1x1x1xf32> to vector<1x8x128xf32>
    %c0_15 = arith.constant 0 : index
    %c0_16 = arith.constant 0 : index
    %c0_17 = arith.constant 0 : index
    %39 = vector.load %arg4[%c0_15, %c0_16, %c0_17] : memref<1x8x128xf32, #tpu.memory_space<vmem>>, vector<1x8x128xf32>
    tpu.vector_store %arg4[%c0_15, %c0_16, %c0_17], %38 {strides = array<i32>} : memref<1x8x128xf32, #tpu.memory_space<vmem>>, vector<1x8x128xf32>,
    return
  }
  func.func @transform_0(%arg0: i32) -> (i32, i32, i32) {
    %c0_i32 = arith.constant 0 : i32
    %c0_i32_0 = arith.constant 0 : i32
    %c0_i32_1 = arith.constant 0 : i32
    %c0_i32_2 = arith.constant 0 : i32
    return %c0_i32, %c0_i32_0, %c0_i32_1 : i32, i32, i32
  }
  func.func @transform_1(%arg0: i32) -> (i32, i32, i32) {
    %c0_i32 = arith.constant 0 : i32
    %c0_i32_0 = arith.constant 0 : i32
    %c0_i32_1 = arith.constant 0 : i32
    return %arg0, %c0_i32, %c0_i32_0 : i32, i32, i32
  }
  func.func @transform_2(%arg0: i32) -> (i32, i32, i32) {
    %c0_i32 = arith.constant 0 : i32
    %c0_i32_0 = arith.constant 0 : i32
    %c0_i32_1 = arith.constant 0 : i32
    return %arg0, %c0_i32, %c0_i32_0 : i32, i32, i32
  }
  func.func @transform_3(%arg0: i32) -> (i32, i32, i32) {
    %c0_i32 = arith.constant 0 : i32
    %c0_i32_0 = arith.constant 0 : i32
    %c0_i32_1 = arith.constant 0 : i32
    return %arg0, %c0_i32, %c0_i32_0 : i32, i32, i32
  }
}

</mosaic_0001>

<bundles_post_ra>
// kernel: tpu_custom_call.1
= control target key start
LH: loop header
LB: loop body
LE: loop exit
PB: predicated region body
PF: predicated region fallthrough
CT: control target
= control target key end

     0   :  { %8 = vsyncpa [#allocation3], 0  ;;  %s478_s0 = inlined_call_operand.hbm [shape: f32[2,16,16], index: 0, kind: input, shape index: {}]   ;;  %s479_s1 = inlined_call_operand.hbm [shape: f32[1,1,16], index: 1, kind: input, shape index: {}]   ;;  %s480_s2 = inlined_call_operand.hbm [shape: f32[1,16,32], index: 2, kind: input, shape index: {}]   ;;  %s481_s3 = inlined_call_operand.hbm [shape: f32[1,8,128], index: 3, kind: output, shape index: {}]  }
   0x1   :  { %9 = vsyncpa [#allocation6], 0  ;;  %s29_s14 = sshll.u32 %s479_s1, 4  ;;  %s30_s14 = int_to_ptr.hbm [resolvable:$true] %s29_s14 }
   0x2   :  { %10 = vsyncpa [#allocation4], 0  ;;  %s410_s15 = smov [#allocation5]   ;;  %s15_s19 = sshll.u32 %s478_s0, 4  ;;  %s16_s19 = int_to_ptr.hbm [resolvable:$true] %s15_s19 }
   0x3   :  { %s31_s16 = sshll.u32 %s410_s15, 4  ;;  %s411_s20 = smov [#allocation2]   ;;  %s32_s16 = int_to_ptr.vmem [resolvable:$true] %s31_s16 }
   0x4   :  { %34 = dma.hbm_to_vmem [thread:$0]  %s30_s14, 16, %s32_s16, [#allocation6]  }
   0x5   :  { %s17_s21 = sshll.u32 %s411_s20, 4  ;;  %s412_s22 = smov 128   ;;  %s18_s21 = int_to_ptr.vmem [resolvable:$true] %s17_s21 }
   0x6   :  { %s413_s23 = smov 8   ;;  %s39_s1 = sshll.u32 %s480_s2, 4  ;;  %s40_s1 = int_to_ptr.hbm [resolvable:$true] %s39_s1 }
   0x7   :  { %23 = dma.hbm_to_vmem [thread:$0]  %s16_s19, 512, %s18_s21, [#allocation3], %s412_s22, %s412_s22, %s413_s23  }
   0x8   :  { %s414_s26 = smov [#allocation7]  }
   0x9   :  { %s41_s27 = sshll.u32 %s414_s26, 4  ;;  %s42_s27 = int_to_ptr.vmem [resolvable:$true] %s41_s27 }
   0xa   :  { %47 = dma.hbm_to_vmem [thread:$0]  %s40_s1, 256, %s42_s27, [#allocation6], %s412_s22, %s412_s22, %s413_s23  }
   0xb   :  { %404 = dma.done.wait [#allocation3], 512  }
   0xc   :  { %405 = vsyncadd [#allocation3], 4294966784 }
   0xd   :  { %406 = dma.done.wait [#allocation6], 272  }
   0xe   :  { %407 = vsyncadd [#allocation6], 4294967024  ;;  %vm68_vm0 = vcmask 261120   ;;  %v61_v0 = vld [vmem:[#allocation7 + $0x8] sm:$0xff]  ;;  %v60_v1 = vld [vmem:[#allocation7] sm:$0xff]  ;;  %vm100_vm1 = vcmask 130048   ;;  %v167_v43 = vlaneseq }
   0xf   :  { %272 = vmatpush.xpose.msk.msra.mxu0 %vm68_vm0, %v61_v0  ;;  %276 = vmatpush.xpose.msk.msra.mxu1 %vm68_vm0, %v61_v0  ;;  %v62_v2 = vld [vmem:[#allocation2] sm:$0xff]  ;;  %v63_v5 = vld [vmem:[#allocation2 + $0x8] sm:$0xff]  ;;  %vm172_vm14 = vcmask 130112   ;;  %vm241_vm15 = vcmask 122880   ;;  %s416_s0 = smov [#allocation8]   ;;  %s261_s30 = sshll.u32 %s481_s3, 4  ;;  %s262_s30 = int_to_ptr.hbm [resolvable:$true] %s261_s30 }
  0x10   :  { %v463_v50 = vand.u32 127, %v167_v43  ;;  %v214_v51 = vshrl.u32 %v167_v43, 7  ;;  %v291_v60 = vld [vmem:[#allocation5] ss:$0 sm:$0xff]  ;;  %s259_s2 = sshll.u32 %s416_s0, 4  ;;  %s260_s2 = int_to_ptr.vmem [resolvable:$true] %s259_s2 }
  0x12   :  { %287 = vset.pattern.permute.xlu2 %v214_v51  ;;  %v170_v56 = vadd.s32 4294967288, %v463_v50 }
  0x13   :  { %273 = vmatpush.xpose.msk.msra.mxu0 %vm68_vm0, %v60_v1  ;;  %277 = vmatpush.xpose.msk.msra.mxu1 %vm68_vm0, %v60_v1 }
  0x16   :  { %274 = vmatmul.msk.f32.vlgmr.msra.gmra.mxu0 %vm68_vm0, %v60_v1  ;;  %275 = vmatmul.msk.f32.vlgmr.msra.gmra.mxu1 %vm68_vm0, %v61_v0 }
  0x1a   :  { %217 = vperm.xlu2 %287, %v291_v60  }
  0x93   :  { %v446_v3 = vpop.f32.mrf.mxu0  ;;  %v449_v6 = vpop.f32.mrf.mxu1 }
  0x94   :  { %v98_v4 = vmul.f32 %v446_v3, %v62_v2  ;;  %v99_v8 = vmul.f32 %v449_v6, %v63_v5 }
  0x96   :  { %v101_v7 = vsel %vm100_vm1, %v98_v4, 0.0  ;;  %v104_v9 = vsel %vm100_vm1, %v99_v8, 0.0  ;;  %v221_v8 = vadd.s32 8, %v214_v51 }
  0x97   :  { %102 = vadd.xlane.f32.xlu0 %v101_v7 }
  0x98   :  { %288 = vset.pattern.permute.xlu2 %v221_v8 }
  0x9f   :  { %105 = vadd.xlane.f32.xlu0 %v104_v9  ;;  %v65_v9 = vld [vmem:[#allocation2 + $0x10] sm:$0xff] }
  0xa0   :  { %223 = vperm.xlu2 %288, %v291_v60  }
 0x10a   :  { %v103_v10 = vpop.xlane.xlu0 %102 }
 0x10b   :  { %292 = vrsqrt.f32 %v103_v10  ;;  %vm114_vm2 = vcmp.eq.f32.partialorder %v103_v10, inf  ;;  %v117_v22 = vand.u32 2147483648, %v103_v10  ;;  %vm116_vm3 = vcmp.eq.f32.partialorder %v103_v10, 0.0 }
 0x111   :  { %v293_v11 = vpop.eup %292 }
 0x112   :  { %v108_v12 = vmul.f32 %v293_v11, %v103_v10  ;;  %v454_v13 = vpop.xlane.xlu0 %105 }
 0x113   :  { %294 = vrsqrt.f32 %v454_v13  ;;  %vm126_vm4 = vcmp.eq.f32.partialorder %v454_v13, inf  ;;  %v129_v30 = vand.u32 2147483648, %v454_v13  ;;  %vm128_vm5 = vcmp.eq.f32.partialorder %v454_v13, 0.0 }
 0x114   :  { %v109_v14 = vmul.f32 %v293_v11, %v108_v12 }
 0x116   :  { %v110_v15 = vmul.f32 0.5, %v109_v14 }
 0x118   :  { %v111_v16 = vsub.f32 1.5, %v110_v15 }
 0x119   :  { %v295_v17 = vpop.eup %294 }
 0x11a   :  { %v112_v18 = vmul.f32 %v293_v11, %v111_v16  ;;  %v120_v19 = vmul.f32 %v295_v17, %v454_v13  ;;  %v415_v16 = vmov 0  }
 0x11b   :  { %289 = vset.pattern.permute.xlu0 %v415_v16  ;;  %290 = vset.pattern.permute.xlu1 %v415_v16 }
 0x11c   :  { %v113_v20 = vmul.f32 %v112_v18, %v103_v10  ;;  %v121_v21 = vmul.f32 %v295_v17, %v120_v19 }
 0x11e   :  { %v115_v23 = vsel %vm114_vm2, %v103_v10, %v113_v20  ;;  %v122_v24 = vmul.f32 0.5, %v121_v21  ;;  %v218_v21 = vpop.permute.xlu2 %217 }
 0x11f   :  { %v118_v25 = vsel %vm116_vm3, %v117_v22, %v115_v23 }
 0x120   :  { %v131_v26 = vmax.f32 %v118_v25, 1e-08  ;;  %v123_v27 = vsub.f32 1.5, %v122_v24 }
 0x122   :  { %296 = vrcp.f32 %v131_v26  ;;  %v124_v28 = vmul.f32 %v295_v17, %v123_v27  ;;  %v144_v37 = vand.u32 2147483648, %v131_v26  ;;  %v142_v39 = vand.u32 2147483647, %v131_v26 }
 0x123   :  { %vm138_vm7 = vweird.f32 %v131_v26 }
 0x124   :  { %v125_v29 = vmul.f32 %v124_v28, %v454_v13  ;;  %v145_v42 = vor.u32 1.1754944e-38, %v144_v37  ;;  %vm143_vm9 = vcmp.eq.f32.partialorder %v142_v39, 8.507059e+37 }
 0x126   :  { %v127_v31 = vsel %vm126_vm4, %v454_v13, %v125_v29  ;;  %v224_v28 = vpop.permute.xlu2 %223 }
 0x127   :  { %v130_v32 = vsel %vm128_vm5, %v129_v30, %v127_v31 }
 0x128   :  { %v297_v33 = vpop.eup %296  ;;  %v132_v34 = vmax.f32 %v130_v32, 1e-08 }
 0x129   :  { %v134_v35 = vmul.f32 %v297_v33, %v131_v26  ;;  %vm139_vm6 = vweird.f32 %v297_v33 }
 0x12a   :  { %298 = vrcp.f32 %v132_v34  ;;  %vm140_vm8 = vmor %vm138_vm7, %vm139_vm6  ;;  %v159_v49 = vand.u32 2147483648, %v132_v34  ;;  %v157_v53 = vand.u32 2147483647, %v132_v34  ;;  %vm153_vm11 = vweird.f32 %v132_v34 }
 0x12b   :  { %v135_v36 = vsub.f32 1.0, %v134_v35 }
 0x12c   :  { %v160_v57 = vor.u32 1.1754944e-38, %v159_v49  ;;  %vm158_vm13 = vcmp.eq.f32.partialorder %v157_v53, 8.507059e+37 }
 0x12d   :  { %v136_v38 = vmul.f32 %v297_v33, %v135_v36 }
 0x12f   :  { %v137_v40 = vadd.f32 %v297_v33, %v136_v38 }
 0x130   :  { %v299_v41 = vpop.eup %298 }
 0x131   :  { %v141_v44 = vsel %vm140_vm8, %v297_v33, %v137_v40  ;;  %v149_v45 = vmul.f32 %v299_v41, %v132_v34  ;;  %vm154_vm10 = vweird.f32 %v299_v41 }
 0x132   :  { %v146_v46 = vsel %vm143_vm9, %v145_v42, %v141_v44  ;;  %vm155_vm12 = vmor %vm153_vm11, %vm154_vm10 }
 0x133   :  { %v150_v47 = vsub.f32 1.0, %v149_v45  ;;  %v205_v48 = vmul.f32 %v146_v46, %v103_v10  ;;  %v169_v61 = vperm.slane %v146_v46, %v463_v50  ;;  %v163_v0 = vmul.f32 %v146_v46, %v446_v3 }
 0x135   :  { %v151_v52 = vmul.f32 %v299_v41, %v150_v47  ;;  %v207_v54 = vmul.f32 %v205_v48, %v146_v46 }
 0x137   :  { %v152_v55 = vadd.f32 %v299_v41, %v151_v52 }
 0x139   :  { %v156_v58 = vsel %vm155_vm12, %v299_v41, %v152_v55 }
 0x13a   :  { %v161_v59 = vsel %vm158_vm13, %v160_v57, %v156_v58 }
 0x13b   :  { %v171_v62 = vperm.slane %v161_v59, %v170_v56  ;;  %v164_v63 = vmul.f32 %v161_v59, %v449_v6  ;;  %v66_v6 = vld [vmem:[#allocation2 + $0x18] sm:$0xff]  ;;  %v206_v24 = vmul.f32 %v161_v59, %v454_v13 }
 0x13d   :  { %v173_v1 = vsel %vm172_vm14, %v171_v62, %v169_v61  ;;  %v208_v27 = vmul.f32 %v206_v24, %v161_v59 }
 0x13e   :  { %v187_v2 = vmul.f32 %v173_v1, %v163_v0  ;;  %v188_v4 = vmul.f32 %v173_v1, %v164_v63 }
 0x140   :  { %v189_v5 = vmul.f32 1.442695, %v187_v2  ;;  %v191_v7 = vmul.f32 1.442695, %v188_v4 }
 0x142   :  { %300 = vpow2.f32 %v189_v5 }
 0x143   :  { %302 = vpow2.f32 %v191_v7 }
 0x148   :  { %v301_v10 = vpop.eup %300 }
 0x149   :  { %v193_v11 = vmul.f32 %v301_v10, %v65_v9  ;;  %v303_v14 = vpop.eup %302 }
 0x14a   :  { %v194_v3 = vmul.f32 %v303_v14, %v66_v6 }
 0x14b   :  { %v195_v12 = vsel %vm100_vm1, %v193_v11, 0.0 }
 0x14c   :  { %196 = vadd.xlane.f32.xlu1 %v195_v12  ;;  %v198_v15 = vsel %vm100_vm1, %v194_v3, 0.0 }
 0x154   :  { %199 = vadd.xlane.f32.xlu1 %v198_v15 }
 0x1bf   :  { %v197_v17 = vpop.xlane.xlu1 %196 }
 0x1c0   :  { %304 = vlog2.f32 %v197_v17 }
 0x1c6   :  { %v305_v18 = vpop.eup %304 }
 0x1c7   :  { %v202_v19 = vmul.f32 0.6931472, %v305_v18  ;;  %v200_v20 = vpop.xlane.xlu1 %199 }
 0x1c8   :  { %306 = vlog2.f32 %v200_v20 }
 0x1c9   :  { %v209_v22 = vsub.f32 %v202_v19, %v207_v54 }
 0x1cb   :  { %v227_v23 = vmul.f32 %v218_v21, %v209_v22 }
 0x1cd   :  { %232 = vperm.xlu0 %289, %v227_v23  }
 0x1ce   :  { %v307_v25 = vpop.eup %306 }
 0x1cf   :  { %v204_v26 = vmul.f32 0.6931472, %v307_v25 }
 0x1d1   :  { %v210_v29 = vsub.f32 %v204_v26, %v208_v27 }
 0x1d3   :  { %v228_v30 = vmul.f32 %v224_v28, %v210_v29 }
 0x1d5   :  { %235 = vperm.xlu1 %290, %v228_v30  }
 0x23f   :  { %v233_v31 = vpop.permute.xlu0 %232 }
 0x240   :  { %v237_v33 = vperm.slane %v233_v31, %v463_v50 }
 0x247   :  { %v236_v32 = vpop.permute.xlu1 %235 }
 0x248   :  { %v238_v34 = vperm.slane %v236_v32, %v170_v56 }
 0x24a   :  { %v239_v35 = vsel %vm172_vm14, %v238_v34, %v237_v33 }
 0x24b   :  { %v242_v36 = vsel %vm241_vm15, %v239_v35, 0.0 }
 0x24c   :  { %243 = vadd.xlane.f32.xlu2 %v242_v36 }
 0x2bf   :  { %v244_v37 = vpop.xlane.xlu2 %243 }
 0x2c0   :  { %v245_v13 = vrot.slane %v244_v37, 4 }
 0x2c2   :  { %v246_v38 = vadd.f32 %v245_v13, %v244_v37 }
 0x2c4   :  { %v247_v39 = vrot.slane %v246_v38, 2 }
 0x2c6   :  { %v248_v40 = vadd.f32 %v247_v39, %v246_v38 }
 0x2c8   :  { %v249_v41 = vrot.slane %v248_v40, 1 }
 0x2ca   :  { %v250_v42 = vadd.f32 %v249_v41, %v248_v40 }
 0x2cc   :  { %278 = vpush %v250_v42 }
 0x2fd   :  { %s279_s4 = spop %278 }
 0x2fe   :  { %v252_v43 = vstv %s279_s4 }
 0x2ff   :  { %253 = vst [vmem:[#allocation8] sm:$0xff] %v252_v43 }
 0x300   :  { %264 = dma.vmem_to_hbm [thread:$0]  %s260_s2, 128, %s262_s30, [#allocation4]  }
 0x301   :  { %408 = dma.done.wait [#allocation4], 128  }
 0x302   :  { %409 = vsyncadd [#allocation4], 4294967168 }
 0x303   :  { %269 = vsyncpa [#allocation3], 1 }
 0x304   :  { %270 = vsyncpa [#allocation6], 1 }
 0x305   :  { %271 = vsyncpa [#allocation4], 1 }

</bundles_post_ra>
